<compile_context>
chip_gen: v7x
topology: tpu7x:2x2x1
jax: 0.10.0
libtpu: 0.0.40
codegen_flags: <defaults>
</compile_context>

<pallas_src>
import functools
import math

import jax
import jax.numpy as jnp
from jax import lax
from jax.experimental import pallas as pl
from jax.experimental.pallas import tpu as pltpu


# ----------------------------- Pallas kernel ------------------------------ #
def _self_attn_kernel(q_ref, k_ref,
                      wq_ref, bq_ref,
                      wkv_ref, bkv_ref,
                      wo_ref, bo_ref,
                      out_ref,
                      qp_ref, m_ref, l_ref, acc_ref,
                      *, ct):
    """Channel-first flash-style attention tile.

    q_ref : (1, Cq, TQ) bf16      k_ref : (1, Ck, TK) bf16
    wq_ref: (Ct, Cq)   bq_ref: (Ct, 1)      -- query_project (conv1x1+BN folded)
    wkv_ref:(2Ct, Ck)  bkv_ref:(2Ct, 1)     -- fused key_project | value_project
    wo_ref: (Cout, Ct) bo_ref: (Cout, 1)    -- out_project
    out_ref:(1, Cout, TQ) f32 (lane-dense)
    scratch: qp (Ct,TQ) bf16, m (1,TQ) f32, l (1,TQ) f32, acc (Ct,TQ) f32
    """
    ki = pl.program_id(2)
    nk = pl.num_programs(2)

    @pl.when(ki == 0)
    def _init():
        # query projection: [Ct,Cq] @ [Cq,TQ] -> [Ct,TQ]; +bias; ReLU
        qp = jnp.dot(wq_ref[...], q_ref[0], preferred_element_type=jnp.float32)
        qp = jnp.maximum(qp + bq_ref[...], 0.0)
        qp_ref[...] = qp.astype(qp_ref.dtype)
        m_ref[...] = jnp.full_like(m_ref, -jnp.inf)
        l_ref[...] = jnp.zeros_like(l_ref)
        acc_ref[...] = jnp.zeros_like(acc_ref)

    # fused K/V projection: [2Ct,Ck] @ [Ck,TK] -> [2Ct,TK]; +bias; ReLU
    kv = jnp.dot(wkv_ref[...], k_ref[0], preferred_element_type=jnp.float32)
    kv = jnp.maximum(kv + bkv_ref[...], 0.0)
    key_cf = kv[:ct, :].astype(jnp.bfloat16)     # [Ct, TK]
    val_cf = kv[ct:, :].astype(jnp.bfloat16)     # [Ct, TK]

    # sim^T = K^T Q (contract channel dim of both) -> [TK, TQ]; no XLU transpose.
    sim = lax.dot_general(key_cf, qp_ref[...],
                          (((0,), (0,)), ((), ())),
                          preferred_element_type=jnp.float32)
    sim = sim * (ct ** -0.5)                     # matmul_norm=True

    # online softmax over keys (axis 0), all elementwise math in f32
    m_prev = m_ref[...]
    m_new = jnp.maximum(m_prev, jnp.max(sim, axis=0, keepdims=True))   # [1, TQ]
    alpha = jnp.exp(m_prev - m_new)
    p = jnp.exp(sim - m_new)                                           # [TK, TQ]
    l_ref[...] = alpha * l_ref[...] + jnp.sum(p, axis=0, keepdims=True)
    # acc += V @ P  (contract TK) -> [Ct, TQ]
    pv = lax.dot_general(val_cf, p.astype(jnp.bfloat16),
                         (((1,), (0,)), ((), ())),
                         preferred_element_type=jnp.float32)
    acc_ref[...] = alpha * acc_ref[...] + pv
    m_ref[...] = m_new

    @pl.when(ki == nk - 1)
    def _finalize():
        ctx = acc_ref[...] * pl.reciprocal(l_ref[...], approx=True)    # [Ct, TQ]
        # out_project: [Cout,Ct] @ [Ct,TQ] -> [Cout,TQ]; +bias; ReLU
        out = jnp.dot(wo_ref[...], ctx.astype(jnp.bfloat16),
                      preferred_element_type=jnp.float32)
        out = jnp.maximum(out + bo_ref[...], 0.0)
        out_ref[0] = out.astype(out_ref.dtype)


# ------------------------------ Wrapper ------------------------------------ #
def self_attention_block(query_feats, key_feats, params, *,
                         tq=128, tk=128, compute_dtype=jnp.bfloat16):
    """query_feats/key_feats: NCHW.  Returns NCHW context, like the nn.Module."""
    B, Cq, H, W = query_feats.shape
    _, Ck, _, _ = key_feats.shape
    N = H * W

    wq, bq, wk, bk, wv, bv, wo, bo = params
    Ct = wq.shape[1]
    Cout = wo.shape[1]

    tq = min(tq, N)
    tk = min(tk, N)
    assert N % tq == 0 and N % tk == 0, (N, tq, tk)

    # NCHW -> channel-first [B, C, N]: a free reshape, no transpose needed.
    q = query_feats.reshape(B, Cq, N).astype(compute_dtype)
    k = key_feats.reshape(B, Ck, N).astype(compute_dtype)

    # Channel-first (transposed) weights; biases as [C, 1] columns (f32).
    wq_t = wq.T.astype(compute_dtype)                                    # [Ct, Cq]
    wkv_t = jnp.concatenate([wk, wv], axis=1).T.astype(compute_dtype)    # [2Ct, Ck]
    wo_t = wo.T.astype(compute_dtype)                                    # [Cout, Ct]
    bq_c = bq.T.astype(jnp.float32)                                      # [Ct, 1]
    bkv_c = jnp.concatenate([bk, bv], axis=1).T.astype(jnp.float32)      # [2Ct, 1]
    bo_c = bo.T.astype(jnp.float32)                                      # [Cout, 1]

    kernel = functools.partial(_self_attn_kernel, ct=Ct)

    out = pl.pallas_call(
        kernel,
        out_shape=jax.ShapeDtypeStruct((B, Cout, N), jnp.float32),
        grid_spec=pltpu.PrefetchScalarGridSpec(
            num_scalar_prefetch=0,
            grid=(B, N // tq, N // tk),
            in_specs=[
                pl.BlockSpec((1, Cq, tq), lambda b, qi, ki: (b, 0, qi)),
                pl.BlockSpec((1, Ck, tk), lambda b, qi, ki: (b, 0, ki)),
                pl.BlockSpec((Ct, Cq), lambda b, qi, ki: (0, 0)),
                pl.BlockSpec((Ct, 1), lambda b, qi, ki: (0, 0)),
                pl.BlockSpec((2 * Ct, Ck), lambda b, qi, ki: (0, 0)),
                pl.BlockSpec((2 * Ct, 1), lambda b, qi, ki: (0, 0)),
                pl.BlockSpec((Cout, Ct), lambda b, qi, ki: (0, 0)),
                pl.BlockSpec((Cout, 1), lambda b, qi, ki: (0, 0)),
            ],
            out_specs=pl.BlockSpec((1, Cout, tq), lambda b, qi, ki: (b, 0, qi)),
            scratch_shapes=[
                pltpu.VMEM((Ct, tq), compute_dtype),   # projected query tile
                pltpu.VMEM((1, tq), jnp.float32),      # running max
                pltpu.VMEM((1, tq), jnp.float32),      # running denominator
                pltpu.VMEM((Ct, tq), jnp.float32),     # context accumulator
            ],
        ),
        compiler_params=pltpu.CompilerParams(
            dimension_semantics=("parallel", "parallel", "arbitrary"),
            vmem_limit_bytes=32 * 1024 * 1024,
        ),
    )(q, k, wq_t, bq_c, wkv_t, bkv_c, wo_t, bo_c)

    # Output is already channel-first: [B, Cout, N] -> NCHW via free reshape.
    return out.reshape(B, Cout, H, W)


# ------------------------- Parameter construction -------------------------- #
def make_folded_projection(key, c_in, c_out, eps=1e-5):
    """Deterministic Conv1x1(no bias) + BatchNorm(eval) folded into (W, b).

    Conv weight W_conv: [Cout, Cin] (1x1 kernel squeezed).
    BN(eval): y = gamma * (x - mean) / sqrt(var + eps) + beta
    Folded:   x @ W_folded + bias, with
              scale = gamma / sqrt(var + eps)
              W_folded[Cin, Cout] = W_conv.T * scale
              bias = beta - mean * scale
    """
    k1, k2, k3, k4, k5 = jax.random.split(key, 5)
    w_conv = jax.random.normal(k1, (c_out, c_in), jnp.float32) * 0.1
    gamma = 1.0 + 0.1 * jax.random.normal(k2, (c_out,), jnp.float32)
    beta = 0.1 * jax.random.normal(k3, (c_out,), jnp.float32)
    run_mean = 0.1 * jax.random.normal(k4, (c_out,), jnp.float32)
    run_var = jnp.abs(jax.random.normal(k5, (c_out,), jnp.float32)) + 0.5

    scale = gamma / jnp.sqrt(run_var + eps)
    w_folded = w_conv.T * scale[None, :]          # [Cin, Cout]
    bias = (beta - run_mean * scale)[None, :]     # [1, Cout]
    return w_folded.astype(jnp.float32), bias.astype(jnp.float32)


# ----------------------------- Pure-JAX ref -------------------------------- #
def reference(query_feats, key_feats, params):
    wq, bq, wk, bk, wv, bv, wo, bo = params
    B, Cq, H, W = query_feats.shape
    _, Ck, _, _ = key_feats.shape
    N = H * W
    q = jnp.transpose(query_feats.reshape(B, Cq, N), (0, 2, 1))
    k = jnp.transpose(key_feats.reshape(B, Ck, N), (0, 2, 1))

    def proj(x, w, b):
        return jnp.maximum(x @ w + b, 0.0)

    query = proj(q, wq, bq)
    key = proj(k, wk, bk)
    value = proj(k, wv, bv)
    ct = query.shape[-1]
    sim = jnp.einsum("bnc,bmc->bnm", query, key) * (ct ** -0.5)
    attn = jax.nn.softmax(sim, axis=-1)
    ctx = jnp.einsum("bnm,bmc->bnc", attn, value)
    out = proj(ctx, wo, bo)
    return jnp.transpose(out, (0, 2, 1)).reshape(B, -1, H, W)


# --------------------------------- Main ------------------------------------ #
if __name__ == "__main__":
    # Small shapes consistent with the module:
    #   key_in_channels = query_in_channels = 4, transform_channels = 32,
    #   out_channels = 8, spatial 16x16, batch 2.
    B, C_IN, H, W = 2, 4, 16, 16
    C_T, C_OUT = 32, 8

    root = jax.random.PRNGKey(0)
    k_q, k_k, kq_p, kk_p, kv_p, ko_p = jax.random.split(root, 6)

    query_feats = jax.random.normal(k_q, (B, C_IN, H, W), jnp.float32)
    key_feats = jax.random.normal(k_k, (B, C_IN, H, W), jnp.float32)

    wq, bq = make_folded_projection(kq_p, C_IN, C_T)   # query_project
    wk, bk = make_folded_projection(kk_p, C_IN, C_T)   # key_project
    wv, bv = make_folded_projection(kv_p, C_IN, C_T)   # value_project
    wo, bo = make_folded_projection(ko_p, C_T, C_OUT)  # out_project
    params = (wq, bq, wk, bk, wv, bv, wo, bo)

    out = self_attention_block(query_feats, key_feats, params)
    out = jax.block_until_ready(out)

    ref = jax.block_until_ready(reference(query_feats, key_feats, params))
    assert out.shape == (B, C_OUT, H, W), out.shape
    # Tolerance loosened vs the pure-f32 reference because MXU operands are
    # bf16 (f32 accumulation) per the performance review; observed error is
    # O(1e-3).
    if not jnp.allclose(out, ref, atol=2e-2, rtol=2e-2):
        raise AssertionError("Pallas kernel output mismatch vs JAX reference")

    print("KERNEL_OK")
</pallas_src>

<mosaic_0001>
module attributes {stable_mosaic.version = 11 : i64} {
  func.func @_self_attn_kernel(%arg0: i32, %arg1: i32, %arg2: i32, %arg3: memref<1x4x128xbf16, #tpu.memory_space<vmem>>, %arg4: memref<1x4x128xbf16, #tpu.memory_space<vmem>>, %arg5: memref<32x4xbf16, #tpu.memory_space<vmem>>, %arg6: memref<32x1xf32, #tpu.memory_space<vmem>>, %arg7: memref<64x4xbf16, #tpu.memory_space<vmem>>, %arg8: memref<64x1xf32, #tpu.memory_space<vmem>>, %arg9: memref<8x32xbf16, #tpu.memory_space<vmem>>, %arg10: memref<8x1xf32, #tpu.memory_space<vmem>>, %arg11: memref<1x8x128xf32, #tpu.memory_space<vmem>>, %arg12: memref<32x128xbf16, #tpu.memory_space<vmem>>, %arg13: memref<1x128xf32, #tpu.memory_space<vmem>>, %arg14: memref<1x128xf32, #tpu.memory_space<vmem>>, %arg15: memref<32x128xf32, #tpu.memory_space<vmem>>) attributes {dimension_semantics = [#tpu.dimension_semantics<parallel>, #tpu.dimension_semantics<parallel>, #tpu.dimension_semantics<arbitrary>], iteration_bounds = array<i64: 2, 2, 2>, scalar_prefetch = 0 : i64, scratch_operands = 4 : i64, tpu.core_type = #tpu.core_type<tc>, window_params = [{transform_indices = @transform_0, window_bounds = array<i64: 1, 4, 128>}, {transform_indices = @transform_1, window_bounds = array<i64: 1, 4, 128>}, {pipeline_mode = #tpu.pipeline_mode<synchronous>, transform_indices = @transform_2, window_bounds = array<i64: 32, 4>}, {pipeline_mode = #tpu.pipeline_mode<synchronous>, transform_indices = @transform_3, window_bounds = array<i64: 32, 1>}, {pipeline_mode = #tpu.pipeline_mode<synchronous>, transform_indices = @transform_4, window_bounds = array<i64: 64, 4>}, {pipeline_mode = #tpu.pipeline_mode<synchronous>, transform_indices = @transform_5, window_bounds = array<i64: 64, 1>}, {pipeline_mode = #tpu.pipeline_mode<synchronous>, transform_indices = @transform_6, window_bounds = array<i64: 8, 32>}, {pipeline_mode = #tpu.pipeline_mode<synchronous>, transform_indices = @transform_7, window_bounds = array<i64: 8, 1>}, {transform_indices = @transform_8, window_bounds = array<i64: 1, 8, 128>}]} {
    %c0_i32 = arith.constant 0 : i32
    %0 = arith.cmpi eq, %arg2, %c0_i32 : i32
    %1 = arith.extui %0 : i1 to i32
    %c0_i32_0 = arith.constant 0 : i32
    %2 = arith.cmpi ne, %1, %c0_i32_0 : i32
    scf.if %2 {
      %c0_28 = arith.constant 0 : index
      %c0_29 = arith.constant 0 : index
      %46 = vector.load %arg5[%c0_28, %c0_29] : memref<32x4xbf16, #tpu.memory_space<vmem>>, vector<32x4xbf16>
      %c0_30 = arith.constant 0 : index
      %c0_31 = arith.constant 0 : index
      %c0_32 = arith.constant 0 : index
      %47 = vector.load %arg3[%c0_30, %c0_31, %c0_32] : memref<1x4x128xbf16, #tpu.memory_space<vmem>>, vector<1x4x128xbf16>
      %48 = vector.shape_cast %47 : vector<1x4x128xbf16> to vector<4x128xbf16>
      %cst_33 = arith.constant dense<0.000000e+00> : vector<32x128xf32>
      %49 = tpu.matmul %46, %48, %cst_33 {dimension_numbers = #tpu.dot_dimension_numbers<[1], [0], [0], [1], [0, 0, 1, 1], [], []>} : vector<32x4xbf16>, vector<4x128xbf16>, vector<32x128xf32> -> vector<32x128xf32>
      %c0_34 = arith.constant 0 : index
      %c0_35 = arith.constant 0 : index
      %50 = vector.load %arg6[%c0_34, %c0_35] : memref<32x1xf32, #tpu.memory_space<vmem>>, vector<32x1xf32>
      %51 = vector.broadcast %50 : vector<32x1xf32> to vector<32x128xf32>
      %52 = arith.addf %49, %51 : vector<32x128xf32>
      %cst_36 = arith.constant 0.000000e+00 : f32
      %53 = vector.broadcast %cst_36 : f32 to vector<32x128xf32>
      %54 = arith.maximumf %52, %53 : vector<32x128xf32>
      %55 = arith.truncf %54 : vector<32x128xf32> to vector<32x128xbf16>
      %c0_37 = arith.constant 0 : index
      %c0_38 = arith.constant 0 : index
      %56 = vector.load %arg12[%c0_37, %c0_38] : memref<32x128xbf16, #tpu.memory_space<vmem>>, vector<32x128xbf16>
      tpu.vector_store %arg12[%c0_37, %c0_38], %55 {strides = array<i32>} : memref<32x128xbf16, #tpu.memory_space<vmem>>, vector<32x128xbf16>,
      %cst_39 = arith.constant 0xFF800000 : f32
      %57 = vector.broadcast %cst_39 : f32 to vector<1x128xf32>
      %c0_40 = arith.constant 0 : index
      %c0_41 = arith.constant 0 : index
      %58 = vector.load %arg13[%c0_40, %c0_41] : memref<1x128xf32, #tpu.memory_space<vmem>>, vector<1x128xf32>
      tpu.vector_store %arg13[%c0_40, %c0_41], %57 {strides = array<i32>} : memref<1x128xf32, #tpu.memory_space<vmem>>, vector<1x128xf32>,
      %cst_42 = arith.constant 0.000000e+00 : f32
      %59 = vector.broadcast %cst_42 : f32 to vector<1x128xf32>
      %c0_43 = arith.constant 0 : index
      %c0_44 = arith.constant 0 : index
      %60 = vector.load %arg14[%c0_43, %c0_44] : memref<1x128xf32, #tpu.memory_space<vmem>>, vector<1x128xf32>
      tpu.vector_store %arg14[%c0_43, %c0_44], %59 {strides = array<i32>} : memref<1x128xf32, #tpu.memory_space<vmem>>, vector<1x128xf32>,
      %cst_45 = arith.constant 0.000000e+00 : f32
      %61 = vector.broadcast %cst_45 : f32 to vector<32x128xf32>
      %c0_46 = arith.constant 0 : index
      %c0_47 = arith.constant 0 : index
      %62 = vector.load %arg15[%c0_46, %c0_47] : memref<32x128xf32, #tpu.memory_space<vmem>>, vector<32x128xf32>
      tpu.vector_store %arg15[%c0_46, %c0_47], %61 {strides = array<i32>} : memref<32x128xf32, #tpu.memory_space<vmem>>, vector<32x128xf32>,
    } else {
    }
    %c0 = arith.constant 0 : index
    %c0_1 = arith.constant 0 : index
    %3 = vector.load %arg7[%c0, %c0_1] : memref<64x4xbf16, #tpu.memory_space<vmem>>, vector<64x4xbf16>
    %c0_2 = arith.constant 0 : index
    %c0_3 = arith.constant 0 : index
    %c0_4 = arith.constant 0 : index
    %4 = vector.load %arg4[%c0_2, %c0_3, %c0_4] : memref<1x4x128xbf16, #tpu.memory_space<vmem>>, vector<1x4x128xbf16>
    %5 = vector.shape_cast %4 : vector<1x4x128xbf16> to vector<4x128xbf16>
    %cst = arith.constant dense<0.000000e+00> : vector<64x128xf32>
    %6 = tpu.matmul %3, %5, %cst {dimension_numbers = #tpu.dot_dimension_numbers<[1], [0], [0], [1], [0, 0, 1, 1], [], []>} : vector<64x4xbf16>, vector<4x128xbf16>, vector<64x128xf32> -> vector<64x128xf32>
    %c0_5 = arith.constant 0 : index
    %c0_6 = arith.constant 0 : index
    %7 = vector.load %arg8[%c0_5, %c0_6] : memref<64x1xf32, #tpu.memory_space<vmem>>, vector<64x1xf32>
    %8 = vector.broadcast %7 : vector<64x1xf32> to vector<64x128xf32>
    %9 = arith.addf %6, %8 : vector<64x128xf32>
    %cst_7 = arith.constant 0.000000e+00 : f32
    %10 = vector.broadcast %cst_7 : f32 to vector<64x128xf32>
    %11 = arith.maximumf %9, %10 : vector<64x128xf32>
    %12 = vector.extract_strided_slice %11 {offsets = [0, 0], sizes = [32, 128], strides = [1, 1]} : vector<64x128xf32> to vector<32x128xf32>
    %13 = arith.truncf %12 : vector<32x128xf32> to vector<32x128xbf16>
    %14 = vector.extract_strided_slice %11 {offsets = [32, 0], sizes = [32, 128], strides = [1, 1]} : vector<64x128xf32> to vector<32x128xf32>
    %15 = arith.truncf %14 : vector<32x128xf32> to vector<32x128xbf16>
    %c0_8 = arith.constant 0 : index
    %c0_9 = arith.constant 0 : index
    %16 = vector.load %arg12[%c0_8, %c0_9] : memref<32x128xbf16, #tpu.memory_space<vmem>>, vector<32x128xbf16>
    %cst_10 = arith.constant dense<0.000000e+00> : vector<128x128xf32>
    %17 = tpu.matmul %13, %16, %cst_10 {dimension_numbers = #tpu.dot_dimension_numbers<[0], [0], [1], [1], [0, 1, 1, 1], [], []>} : vector<32x128xbf16>, vector<32x128xbf16>, vector<128x128xf32> -> vector<128x128xf32>
    %cst_11 = arith.constant 0.176776692 : f32
    %18 = vector.broadcast %cst_11 : f32 to vector<128x128xf32>
    %19 = arith.mulf %17, %18 : vector<128x128xf32>
    %c0_12 = arith.constant 0 : index
    %c0_13 = arith.constant 0 : index
    %20 = vector.load %arg13[%c0_12, %c0_13] : memref<1x128xf32, #tpu.memory_space<vmem>>, vector<1x128xf32>
    %cst_14 = arith.constant dense<0xFF800000> : vector<128xf32>
    %21 = vector.multi_reduction <maximumf>, %19, %cst_14 [0] : vector<128x128xf32> to vector<128xf32>
    %22 = vector.shape_cast %21 : vector<128xf32> to vector<1x128xf32>
    %23 = arith.maximumf %20, %22 : vector<1x128xf32>
    %24 = arith.subf %20, %23 : vector<1x128xf32>
    %25 = math.exp %24 : vector<1x128xf32>
    %26 = vector.broadcast %23 : vector<1x128xf32> to vector<128x128xf32>
    %27 = arith.subf %19, %26 : vector<128x128xf32>
    %28 = math.exp %27 : vector<128x128xf32>
    %c0_15 = arith.constant 0 : index
    %c0_16 = arith.constant 0 : index
    %29 = vector.load %arg14[%c0_15, %c0_16] : memref<1x128xf32, #tpu.memory_space<vmem>>, vector<1x128xf32>
    %30 = arith.mulf %25, %29 : vector<1x128xf32>
    %cst_17 = arith.constant dense<0.000000e+00> : vector<128xf32>
    %31 = vector.multi_reduction <add>, %28, %cst_17 [0] : vector<128x128xf32> to vector<128xf32>
    %32 = vector.shape_cast %31 : vector<128xf32> to vector<1x128xf32>
    %33 = arith.addf %30, %32 : vector<1x128xf32>
    %c0_18 = arith.constant 0 : index
    %c0_19 = arith.constant 0 : index
    %34 = vector.load %arg14[%c0_18, %c0_19] : memref<1x128xf32, #tpu.memory_space<vmem>>, vector<1x128xf32>
    tpu.vector_store %arg14[%c0_18, %c0_19], %33 {strides = array<i32>} : memref<1x128xf32, #tpu.memory_space<vmem>>, vector<1x128xf32>,
    %35 = arith.truncf %28 : vector<128x128xf32> to vector<128x128xbf16>
    %cst_20 = arith.constant dense<0.000000e+00> : vector<32x128xf32>
    %36 = tpu.matmul %15, %35, %cst_20 {dimension_numbers = #tpu.dot_dimension_numbers<[1], [0], [0], [1], [0, 0, 1, 1], [], []>} : vector<32x128xbf16>, vector<128x128xbf16>, vector<32x128xf32> -> vector<32x128xf32>
    %c0_21 = arith.constant 0 : index
    %c0_22 = arith.constant 0 : index
    %37 = vector.load %arg15[%c0_21, %c0_22] : memref<32x128xf32, #tpu.memory_space<vmem>>, vector<32x128xf32>
    %38 = vector.broadcast %25 : vector<1x128xf32> to vector<32x128xf32>
    %39 = arith.mulf %38, %37 : vector<32x128xf32>
    %40 = arith.addf %39, %36 : vector<32x128xf32>
    %c0_23 = arith.constant 0 : index
    %c0_24 = arith.constant 0 : index
    %41 = vector.load %arg15[%c0_23, %c0_24] : memref<32x128xf32, #tpu.memory_space<vmem>>, vector<32x128xf32>
    tpu.vector_store %arg15[%c0_23, %c0_24], %40 {strides = array<i32>} : memref<32x128xf32, #tpu.memory_space<vmem>>, vector<32x128xf32>,
    %c0_25 = arith.constant 0 : index
    %c0_26 = arith.constant 0 : index
    %42 = vector.load %arg13[%c0_25, %c0_26] : memref<1x128xf32, #tpu.memory_space<vmem>>, vector<1x128xf32>
    tpu.vector_store %arg13[%c0_25, %c0_26], %23 {strides = array<i32>} : memref<1x128xf32, #tpu.memory_space<vmem>>, vector<1x128xf32>,
    %c1_i32 = arith.constant 1 : i32
    %43 = arith.cmpi eq, %arg2, %c1_i32 : i32
    %44 = arith.extui %43 : i1 to i32
    %c0_i32_27 = arith.constant 0 : i32
    %45 = arith.cmpi ne, %44, %c0_i32_27 : i32
    scf.if %45 {
      %c0_28 = arith.constant 0 : index
      %c0_29 = arith.constant 0 : index
      %46 = vector.load %arg15[%c0_28, %c0_29] : memref<32x128xf32, #tpu.memory_space<vmem>>, vector<32x128xf32>
      %c0_30 = arith.constant 0 : index
      %c0_31 = arith.constant 0 : index
      %47 = vector.load %arg14[%c0_30, %c0_31] : memref<1x128xf32, #tpu.memory_space<vmem>>, vector<1x128xf32>
      %48 = tpu.reciprocal %47 {approx = true} : vector<1x128xf32> -> vector<1x128xf32>
      %49 = vector.broadcast %48 : vector<1x128xf32> to vector<32x128xf32>
      %50 = arith.mulf %46, %49 : vector<32x128xf32>
      %c0_32 = arith.constant 0 : index
      %c0_33 = arith.constant 0 : index
      %51 = vector.load %arg9[%c0_32, %c0_33] : memref<8x32xbf16, #tpu.memory_space<vmem>>, vector<8x32xbf16>
      %52 = arith.truncf %50 : vector<32x128xf32> to vector<32x128xbf16>
      %cst_34 = arith.constant dense<0.000000e+00> : vector<8x128xf32>
      %53 = tpu.matmul %51, %52, %cst_34 {dimension_numbers = #tpu.dot_dimension_numbers<[1], [0], [0], [1], [0, 0, 1, 1], [], []>} : vector<8x32xbf16>, vector<32x128xbf16>, vector<8x128xf32> -> vector<8x128xf32>
      %c0_35 = arith.constant 0 : index
      %c0_36 = arith.constant 0 : index
      %54 = vector.load %arg10[%c0_35, %c0_36] : memref<8x1xf32, #tpu.memory_space<vmem>>, vector<8x1xf32>
      %55 = vector.broadcast %54 : vector<8x1xf32> to vector<8x128xf32>
      %56 = arith.addf %53, %55 : vector<8x128xf32>
      %cst_37 = arith.constant 0.000000e+00 : f32
      %57 = vector.broadcast %cst_37 : f32 to vector<8x128xf32>
      %58 = arith.maximumf %56, %57 : vector<8x128xf32>
      %c0_38 = arith.constant 0 : index
      %c0_39 = arith.constant 0 : index
      %c0_40 = arith.constant 0 : index
      %59 = vector.load %arg11[%c0_38, %c0_39, %c0_40] : memref<1x8x128xf32, #tpu.memory_space<vmem>>, vector<1x8x128xf32>
      %60 = vector.shape_cast %59 : vector<1x8x128xf32> to vector<8x128xf32>
      %61 = vector.shape_cast %58 : vector<8x128xf32> to vector<1x8x128xf32>
      tpu.vector_store %arg11[%c0_38, %c0_39, %c0_40], %61 {strides = array<i32>} : memref<1x8x128xf32, #tpu.memory_space<vmem>>, vector<1x8x128xf32>,
    } else {
    }
    return
  }
  func.func @transform_0(%arg0: i32, %arg1: i32, %arg2: i32) -> (i32, i32, i32) {
    %c0_i32 = arith.constant 0 : i32
    %c0_i32_0 = arith.constant 0 : i32
    return %arg0, %c0_i32, %arg1 : i32, i32, i32
  }
  func.func @transform_1(%arg0: i32, %arg1: i32, %arg2: i32) -> (i32, i32, i32) {
    %c0_i32 = arith.constant 0 : i32
    %c0_i32_0 = arith.constant 0 : i32
    return %arg0, %c0_i32, %arg2 : i32, i32, i32
  }
  func.func @transform_2(%arg0: i32, %arg1: i32, %arg2: i32) -> (i32, i32) {
    %c0_i32 = arith.constant 0 : i32
    %c0_i32_0 = arith.constant 0 : i32
    %c0_i32_1 = arith.constant 0 : i32
    return %c0_i32, %c0_i32_0 : i32, i32
  }
  func.func @transform_3(%arg0: i32, %arg1: i32, %arg2: i32) -> (i32, i32) {
    %c0_i32 = arith.constant 0 : i32
    %c0_i32_0 = arith.constant 0 : i32
    %c0_i32_1 = arith.constant 0 : i32
    return %c0_i32, %c0_i32_0 : i32, i32
  }
  func.func @transform_4(%arg0: i32, %arg1: i32, %arg2: i32) -> (i32, i32) {
    %c0_i32 = arith.constant 0 : i32
    %c0_i32_0 = arith.constant 0 : i32
    %c0_i32_1 = arith.constant 0 : i32
    return %c0_i32, %c0_i32_0 : i32, i32
  }
  func.func @transform_5(%arg0: i32, %arg1: i32, %arg2: i32) -> (i32, i32) {
    %c0_i32 = arith.constant 0 : i32
    %c0_i32_0 = arith.constant 0 : i32
    %c0_i32_1 = arith.constant 0 : i32
    return %c0_i32, %c0_i32_0 : i32, i32
  }
  func.func @transform_6(%arg0: i32, %arg1: i32, %arg2: i32) -> (i32, i32) {
    %c0_i32 = arith.constant 0 : i32
    %c0_i32_0 = arith.constant 0 : i32
    %c0_i32_1 = arith.constant 0 : i32
    return %c0_i32, %c0_i32_0 : i32, i32
  }
  func.func @transform_7(%arg0: i32, %arg1: i32, %arg2: i32) -> (i32, i32) {
    %c0_i32 = arith.constant 0 : i32
    %c0_i32_0 = arith.constant 0 : i32
    %c0_i32_1 = arith.constant 0 : i32
    return %c0_i32, %c0_i32_0 : i32, i32
  }
  func.func @transform_8(%arg0: i32, %arg1: i32, %arg2: i32) -> (i32, i32, i32) {
    %c0_i32 = arith.constant 0 : i32
    %c0_i32_0 = arith.constant 0 : i32
    return %arg0, %c0_i32, %arg1 : i32, i32, i32
  }
}

</mosaic_0001>

<bundles_post_ra>
// kernel: tpu_custom_call.1
= control target key start
LH: loop header
LB: loop body
LE: loop exit
PB: predicated region body
PF: predicated region fallthrough
CT: control target
= control target key end

     0   :  { %13 = vsyncpa [#allocation7], 0  ;;  %s1956_s0 = inlined_call_operand.vmem [shape: bf16[2,4,256], index: 0, kind: input, shape index: {}]   ;;  %s1957_s1 = inlined_call_operand.vmem [shape: bf16[2,4,256], index: 1, kind: input, shape index: {}]   ;;  %s1958_s2 = inlined_call_operand.vmem [shape: bf16[32,4], index: 2, kind: input, shape index: {}]   ;;  %s1959_s3 = inlined_call_operand.vmem [shape: f32[32,1], index: 3, kind: input, shape index: {}]   ;;  %s1960_s4 = inlined_call_operand.vmem [shape: bf16[64,4], index: 4, kind: input, shape index: {}]   ;;  %s1961_s5 = inlined_call_operand.vmem [shape: f32[64,1], index: 5, kind: input, shape index: {}]   ;;  %s1962_s6 = inlined_call_operand.vmem [shape: bf16[8,32], index: 6, kind: input, shape index: {}]   ;;  %s1963_s7 = inlined_call_operand.vmem [shape: f32[8,1], index: 7, kind: input, shape index: {}]   ;;  %s1964_s8 = inlined_call_operand.hbm [shape: f32[2,8,256], index: 8, kind: output, shape index: {}]  }
   0x1   :  { %15 = vsyncpa [#allocation7 + $0x1], 0  ;;  %s1630_s27 = smov 0   ;;  %s1632_s28 = smov 0  }
   0x2   :  { %s1634_s29 = smov 0   ;;  %s1636_s30 = smov 0  }
   0x3   :  { %s1638_s9 = smov 0   ;;  %s1640_s10 = smov 0  }
   0x4   :  { %s1642_s11 = smov 0   ;;  %s1644_s12 = smov 0  }
   0x5   :  { %s1646_s13 = smov 0   ;;  %s1648_s14 = smov 0  }
   0x6 LB: > { %1974 = sst [smem:[#allocation9_spill]] %s1539_s27  ;;  %s1189_s15 = sadd.s32 4294967295, %s1575_s14   ;;  %s1575_s14 = sphi %s1648_s14, %s21_s14   ;;  %s1571_s13 = sphi %s1646_s13, %s1996_s13   ;;  %s1567_s12 = sphi %s1644_s12, %s1999_s12   ;;  %s1563_s11 = sphi %s1642_s11, %s1994_s11   ;;  %s1559_s10 = sphi %s1640_s10, %s1993_s10   ;;  %s1555_s9 = sphi %s1638_s9, %s1992_s9   ;;  %s1551_s30 = sphi %s1636_s30, %s1991_s30   ;;  %s1547_s29 = sphi %s1634_s29, %s1990_s29   ;;  %s1543_s28 = sphi %s1632_s28, %s1998_s28   ;;  %s1539_s27 = sphi %s1630_s27, %s1997_s27  }
   0x7   : > { %1975 = sst [smem:[#allocation10_spill]] %s1547_s29  ;;  %s1190_s16 = sadd.s32 4294967294, %s1575_s14  }
   0x8   : > { %1976 = sst [smem:[#allocation11_spill]] %s1563_s11  ;;  %s33_s17 = sadd.s32 1, %s1563_s11 }
   0x9   : > { %1977 = sst [smem:[#allocation12_spill]] %s1567_s12  ;;  %p34_p0 = scmp.ge.s32.totalorder %s33_s17, 2 }
   0xa   : > { %1978 = sst [smem:[#allocation13_spill]] %s1571_s13  ;;  %s36_s18 = sadd.s32 1, %s1567_s12 }
   0xb   : > { %s40_s19 = sadd.s32 1, %s1571_s13  ;;  %p241_p1 = scmp.ne.s32.totalorder %s1547_s29, %s1543_s28 }
   0xc   : > { %s2001_s17 = smov (%p34_p0, %s33_s17), 0  ;;  %s2003_s18 = smov (!%p34_p0, %s36_s18), %s1567_s12 }
   0xd   : > { %1979 = sst [smem:[#allocation14_spill]] %s2001_s17  ;;  %p242_p2 = scmp.eq.s32.totalorder %s1189_s15, 7 }
   0xe   : > { %p247_p3 = scmp.ne.s32.totalorder %s1543_s28, %s1539_s27  ;;  %p38_p4 = scmp.ge.s32.totalorder %s2003_s18, 2 }
   0xf   : > { %p248_p5 = scmp.eq.s32.totalorder %s1190_s16, 7  ;;  %p1692_p6 = por %p242_p2, %p241_p1 }
  0x10   : > { %s2005_s18 = smov (%p38_p4, %s2003_s18), 0  ;;  %s2007_s19 = smov (!%p38_p4, %s40_s19), %s1571_s13 }
  0x11   : > { %1981 = sst [smem:[#allocation15_spill]] %s2005_s18  ;;  %p1699_p7 = por %p248_p5, %p247_p3 }
  0x12   : > { %p1193_p8 = scmp.ge.s32.totalorder %s1575_s14, 1  ;;  %p42_p9 = scmp.ge.s32.totalorder %s2007_s19, 2 }
  0x13   : > { %s1982_s21 = scalar_select %p1699_p7, 1, 0 }
  0x14   : > { %p306_p10 = scmp.lt.s32.totalorder %s1575_s14, 9  ;;  %s227_s22 = ssub.s32 %s1567_s12, %s2005_s18 }
  0x15   : > { %1983 = sst [smem:[#allocation16_spill]] %s1982_s21  ;;  %s2009_s19 = smov (%p42_p9, %s2007_s19), 0 }
  0x16   : > { %1984 = sst [smem:[#allocation17_spill]] %s2009_s19  ;;  %p307_p11 = pnand %p1193_p8, %p306_p10 }
  0x17   : > { %s226_s23 = ssub.s32 %s1571_s13, %s2009_s19  ;;  %s231_s25 = sadd.s32 1, %s1547_s29 }
  0x18   : > { %s228_s24 = sor.u32 %s227_s22, %s226_s23  ;;  %310 = sbr.rel (%p307_p11) target bundleno = 1392 (0x570), region = 52 }
  0x19   : > { %p229_p12 = scmp.eq.s32.totalorder %s228_s24, 0  ;;  %s1972_s15 = sand.u32 (!%p307_p11), 1, %s1543_s28  }
  0x1a   : > { %p351_p13 = scmp.lt.s32.totalorder (!%p307_p11), %s1559_s10, 1  ;;  %s1719_s16 = sshll.u32 (!%p307_p11), %s1972_s15, 3 }
  0x1b   : > { %s1713_s26 = scalar_select %p229_p12, %s1547_s29, %s231_s25  }
  0x1c   : > { %p353_p0 = scmp.lt.s32.totalorder (!%p307_p11), %s1555_s9, 1  ;;  %p361_p1 = scmp.lt.s32.totalorder (!%p307_p11), %s1551_s30, 1 }
  0x1d   : > { %1985 = sst [smem:[#allocation18_spill]] %s1713_s26  ;;  %s350_s27 = scalar_lea.vmem (!%p307_p11), [#allocation6], %s1719_s16 }
  0x1e   : > { %p1199_p2 = scmp.ne.s32.totalorder (!%p307_p11), %s1551_s30, 0 }
  0x1f   : > { %s352_s22 = scalar_select %p351_p13, %s1559_s10, 1 }
  0x20   : > { %s354_s23 = scalar_select %p353_p0, %s1555_s9, 1 }
  0x21   : > { %s1195_s24 = sshll.u32 %s352_s22, 1  ;;  %vm418_vm0 = vcmask (!%p1199_p2), 1041408   ;;  %v1420_v1 = vld [vmem:[%s1958_s2] sm:$0xff] (!%p1199_p2)   ;;  %vm411_vm1 = vcmask (!%p1199_p2), 31744   ;;  %v1421_v3 = vld [vmem:[%s1958_s2 + $0x8] sm:$0xff] (!%p1199_p2)   ;;  %v379_v4 = vld [vmem:[%s1959_s3 + $0x10] sm:$0xff] (!%p1199_p2) }
  0x22   : > { %s356_s25 = sadd.s32 %s1195_s24, %s354_s23  ;;  %1260 = vmatprep.mubr.msk.bf16.mxu0 (!%p1199_p2), %vm411_vm1, %v1420_v1  ;;  %v1577_v5 = vmov (!%p1199_p2), 0   ;;  %v377_v6 = vld [vmem:[%s1959_s3] sm:$0xff] (!%p1199_p2)  ;;  %v380_v7 = vld [vmem:[%s1959_s3 + $0x18] sm:$0xff] (!%p1199_p2)  ;;  %v378_v8 = vld [vmem:[%s1959_s3 + $0x8] sm:$0xff] (!%p1199_p2)  ;;  %v1578_v9 = vmov (!%p1199_p2), -inf   ;;  %v1579_v10 = vmov (!%p1199_p2), 0.0  }
  0x23   : > { %s1196_s19 = sshll.u32 %s356_s25, 1  ;;  %371 = sbr.rel (%p1199_p2) target bundleno = 265 (0x109), region = 56  ;;  %1419 = vset.pattern.permute.xlu1 (!%p1199_p2), %v1577_v5  ;;  %1418 = vset.pattern.permute.xlu0 (!%p1199_p2), %v1577_v5  ;;  %479 = vst [vmem:[#allocation3] sm:$0x1] (!%p1199_p2), %v1578_v9  ;;  %480 = vst [vmem:[#allocation4] sm:$0x1] (!%p1199_p2), %v1579_v10 }
  0x24   : > { %s358_s13 = scalar_lea.vmem %s1956_s0, %s1196_s19  ;;  %393 = vperm.xlu1 (!%p1199_p2), %1419, %v379_v4   ;;  %383 = vperm.xlu0 (!%p1199_p2), %1418, %v377_v6   ;;  %481 = vst [vmem:[#allocation5] sm:$0xff] (!%p1199_p2), %v1579_v10  ;;  %482 = vst [vmem:[#allocation5 + $0x8] sm:$0xff] (!%p1199_p2), %v1579_v10 }
  0x25   : > { %s362_s12 = scalar_select %p361_p1, %s1551_s30, 1 }
  0x26   : > { %v376_v0 = vld [vmem:[%s358_s13] sm:$0x3] (!%p1199_p2)  ;;  %483 = vst [vmem:[#allocation5 + $0x10] sm:$0xff] (!%p1199_p2), %v1579_v10  ;;  %484 = vst [vmem:[#allocation5 + $0x18] sm:$0xff] (!%p1199_p2), %v1579_v10 }
  0x27   : > { %s364_s11 = sadd.s32 %s1195_s24, %s362_s12  ;;  %1322 = vmatprep.subr.msk.bf16.mxu0 (!%p1199_p2), %vm418_vm0, %v376_v0  ;;  %v420_v2 = vsel (!%p1199_p2), %vm418_vm0, %v376_v0, 0 }
  0x28   : > { %s1198_s26 = sshll.u32 %s364_s11, 1  ;;  %1259 = vmatpush3.bf16.msra.mxu0 (!%p1199_p2), %v420_v2  ;;  %398 = vperm.xlu1 (!%p1199_p2), %1419, %v380_v7  }
  0x29   : > { %s1732_s15 = scalar_lea.vmem %s1957_s1, %s1198_s26  ;;  %388 = vperm.xlu0 (!%p1199_p2), %1418, %v378_v8  }
  0x2b   : > { %1261 = vmatmul.mubr.msk.bf16.vlgmr.msra.gmra.mrb[0].mxu0 %vm411_vm1, %v1421_v3 }
  0xa3   : > { %v394_v11 = vpop.permute.xlu1 %393  ;;  %v384_v12 = vpop.permute.xlu0 %383 }
  0xa7   : > { %v399_v16 = vpop.permute.xlu1 %398 }
  0xa8   : > { %v389_v19 = vpop.permute.xlu0 %388 }
  0xfe   : > { %v1262_v13 = vpop.f32.mrb[0].mxu0 }
  0xff   : > { %v465_v14 = vadd.f32 %v1262_v13, %v394_v11  ;;  %v456_v15 = vpop.f32.mrb[1].mxu0 }
 0x100   : > { %v457_v17 = vadd.f32 %v456_v15, %v384_v12  ;;  %v1263_v18 = vpop.f32.mrb[2].mxu0 }
 0x101   : > { %v468_v20 = vadd.f32 %v1263_v18, %v399_v16  ;;  %v459_v21 = vpop.f32.mrb[3].mxu0  ;;  %v473_v23 = vmax.f32 %v465_v14, 0.0 }
 0x102   : > { %v460_v22 = vadd.f32 %v459_v21, %v389_v19  ;;  %v471_v25 = vmax.f32 %v457_v17, 0.0 }
 0x103   : > { %v474_v24 = vmax.f32 %v468_v20, 0.0 }
 0x104   : > { %v472_v26 = vmax.f32 %v460_v22, 0.0 }
 0x105   : > { %v476_v27 = vpack.c.bf16 %v474_v24, %v473_v23 }
 0x106   : > { %v475_v28 = vpack.c.bf16 %v472_v26, %v471_v25 }
 0x107   : > { %478 = vst [vmem:[#allocation2 + $0x8] sm:$0xff] %v476_v27 }
 0x108   : > { %477 = vst [vmem:[#allocation2] sm:$0xff] %v475_v28 }
 0x109 PF: > { %v493_v29 = vld [vmem:[%s1732_s15] sm:$0x3]  ;;  %vm575_vm2 = vcmask 1041408   ;;  %vm562_vm3 = vcmask 31744   ;;  %v1425_v32 = vld [vmem:[%s1960_s4 + $0x8] sm:$0xff]   ;;  %v1426_v33 = vld [vmem:[%s1960_s4 + $0x10] sm:$0xff]  }
 0x10a   : > { %v1424_v30 = vld [vmem:[%s1960_s4] sm:$0xff]   ;;  %1323 = vmatprep.subr.msk.bf16.mxu0 %vm575_vm2, %v493_v29  ;;  %v577_v31 = vsel %vm575_vm2, %v493_v29, 0  ;;  %v1580_v34 = vmov 0   ;;  %v496_v35 = vld [vmem:[%s1961_s5 + $0x10] sm:$0xff]  ;;  %v497_v36 = vld [vmem:[%s1961_s5 + $0x18] sm:$0xff]  ;;  %vm674_vm4 = vcmask 261120  }
 0x10b   : > { %1265 = vmatpush3.bf16.msra.mxu0 %v577_v31  ;;  %1266 = vmatprep.mubr.msk.bf16.mxu0 %vm562_vm3, %v1424_v30  ;;  %v494_v37 = vld [vmem:[%s1961_s5] sm:$0xff]  ;;  %v495_v38 = vld [vmem:[%s1961_s5 + $0x8] sm:$0xff]  ;;  %v1427_v39 = vld [vmem:[%s1960_s4 + $0x18] sm:$0xff]   ;;  %p1220_p3 = scmp.ne.s32.totalorder %s1551_s30, 1 }
 0x10c   : > { %1423 = vset.pattern.permute.xlu1 %v1580_v34  ;;  %1422 = vset.pattern.permute.xlu0 %v1580_v34  ;;  %v498_v40 = vld [vmem:[%s1961_s5 + $0x20] sm:$0xff]  ;;  %v499_v41 = vld [vmem:[%s1961_s5 + $0x28] sm:$0xff]  ;;  %v500_v42 = vld [vmem:[%s1961_s5 + $0x30] sm:$0xff]  ;;  %vm1582_vm5 = vmmov (!%p1220_p3), 0  }
 0x10d   : > { %514 = vperm.xlu1 %1423, %v496_v35   ;;  %504 = vperm.xlu0 %1422, %v494_v37   ;;  %v501_v43 = vld [vmem:[%s1961_s5 + $0x38] sm:$0xff] }
 0x10e   : > { %1267 = vmatmul.mubr.msk.bf16.vlgmr.msra.gmra.mrb[0].mxu0 %vm562_vm3, %v1425_v32  ;;  %v657_v46 = vld [vmem:[#allocation2 + $0x8] sm:$0xff] }
 0x10f   : > { %1270 = vmatprep.mubr.msk.bf16.mxu0 %vm562_vm3, %v1426_v33  ;;  %v656_v44 = vld [vmem:[#allocation2] sm:$0xff] }
 0x110   : > { %1274 = vmatprep.subr.bf16.mxu1 %v656_v44 }
 0x111   : > { %519 = vperm.xlu1 %1423, %v497_v36   ;;  %509 = vperm.xlu0 %1422, %v495_v38  }
 0x112   : > { %1275 = vmatpush3.bf16.msra.mxu1 %v656_v44 }
 0x113   : > { %1276 = vmatprep.subr.bf16.mxu1 %v657_v46 }
 0x115   : > { %524 = vperm.xlu1 %1423, %v498_v40  }
 0x116   : > { %1271 = vmatmul.mubr.msk.bf16.gmra.mrb[4].mxu0 %vm562_vm3, %v1427_v39  ;;  %1277 = vmatpush3.bf16.msra.mxu1 %v657_v46 }
 0x119   : > { %529 = vperm.xlu1 %1423, %v499_v41  }
 0x11d   : > { %534 = vperm.xlu1 %1423, %v500_v42  }
 0x121   : > { %539 = vperm.xlu1 %1423, %v501_v43  }
 0x18c   : > { %v515_v45 = vpop.permute.xlu1 %514  ;;  %v505_v49 = vpop.permute.xlu0 %504 }
 0x190   : > { %v520_v47 = vpop.permute.xlu1 %519  ;;  %v510_v56 = vpop.permute.xlu0 %509 }
 0x194   : > { %v525_v48 = vpop.permute.xlu1 %524 }
 0x198   : > { %v530_v50 = vpop.permute.xlu1 %529 }
 0x19c   : > { %v535_v59 = vpop.permute.xlu1 %534 }
 0x1a0   : > { %v540_v6 = vpop.permute.xlu1 %539 }
 0x1e1   : > { %v1268_v51 = vpop.f32.mrb[0].mxu0 }
 0x1e2   : > { %v622_v52 = vadd.f32 %v1268_v51, %v515_v45  ;;  %v613_v53 = vpop.f32.mrb[1].mxu0 }
 0x1e3   : > { %v614_v54 = vadd.f32 %v613_v53, %v505_v49  ;;  %v1269_v55 = vpop.f32.mrb[2].mxu0 }
 0x1e4   : > { %v625_v57 = vadd.f32 %v1269_v55, %v520_v47  ;;  %v616_v58 = vpop.f32.mrb[3].mxu0  ;;  %v646_v61 = vmax.f32 %v622_v52, 0.0 }
 0x1e5   : > { %v617_v60 = vadd.f32 %v616_v58, %v510_v56  ;;  %v644_v63 = vmax.f32 %v614_v54, 0.0 }
 0x1e6   : > { %v647_v62 = vmax.f32 %v625_v57, 0.0 }
 0x1e7   : > { %v645_v0 = vmax.f32 %v617_v60, 0.0 }
 0x1e8   : > { %v653_v1 = vpack.c.bf16 %v647_v62, %v646_v61 }
 0x1e9   : > { %v652_v2 = vpack.c.bf16 %v645_v0, %v644_v63  ;;  %v1272_v3 = vpop.f32.mrb[4].mxu0 }
 0x1ea   : > { %v638_v4 = vadd.f32 %v1272_v3, %v535_v59  ;;  %v629_v5 = vpop.f32.mrb[5].mxu0 }
 0x1eb   : > { %v630_v7 = vadd.f32 %v629_v5, %v525_v48  ;;  %v1273_v8 = vpop.f32.mrb[6].mxu0  ;;  %658 = vxpose.xlu0.c.b16.start [1/2] (short) %v652_v2, 128 }
 0x1ec   : > { %v641_v9 = vadd.f32 %v1273_v8, %v540_v6  ;;  %v632_v10 = vpop.f32.mrb[7].mxu0  ;;  %v650_v12 = vmax.f32 %v638_v4, 0.0 }
 0x1ed   : > { %v633_v11 = vadd.f32 %v632_v10, %v530_v50  ;;  %v648_v14 = vmax.f32 %v630_v7, 0.0 }
 0x1ee   : > { %v651_v13 = vmax.f32 %v641_v9, 0.0 }
 0x1ef   : > { %v649_v15 = vmax.f32 %v633_v11, 0.0  ;;  %659 = vxpose.xlu0.c.b16.end [2/2] (short) %v653_v1, 128  ;;  %v839_v11 = vlaneseq }
 0x1f0   : > { %v1795_v16 = vpack.c.bf16 %v651_v13, %v650_v12 }
 0x1f1   : > { %v654_v17 = vpack.c.bf16 %v649_v15, %v648_v14  ;;  %v840_v14 = vshrl.u32 %v839_v11, 7 }
 0x1f3   : > { %1310 = vmatprep.mubr.bf16.mxu0 %v654_v17  ;;  %v812_v17 = vld [vmem:[#allocation3] sm:$0x1] }
 0x251   : > { %v666_v18 = vpop.trf.xlu0 }
 0x252   : > { %1278 = vmatprep.mubr.msk.bf16.mxu1 %vm674_vm4, %v666_v18 }
 0x255   : > { %v667_v19 = vpop.trf.xlu0 }
 0x256   : > { %1279 = vmatmul.mubr.msk.bf16.vlgmr.msra.gmra.mrb[0].mxu1 %vm674_vm4, %v667_v19  ;;  %v1853_v19 = vsub.s32 0, %v840_v14 }
 0x259   : > { %v668_v20 = vpop.trf.xlu0 }
 0x25a   : > { %1282 = vmatprep.mubr.msk.bf16.mxu1 %vm674_vm4, %v668_v20 }
 0x25d   : > { %v669_v21 = vpop.trf.xlu0 }
 0x25e   : > { %1283 = vmatmul.mubr.msk.bf16.gmra.mrb[4].mxu1 %vm674_vm4, %v669_v21 }
 0x261   : > { %v670_v22 = vpop.trf.xlu0 }
 0x262   : > { %1286 = vmatprep.mubr.msk.bf16.mxu1 %vm674_vm4, %v670_v22 }
 0x265   : > { %v671_v23 = vpop.trf.xlu0 }
 0x266   : > { %1287 = vmatmul.mubr.msk.bf16.gmra.mrb[8].mxu1 %vm674_vm4, %v671_v23 }
 0x269   : > { %v672_v24 = vpop.trf.xlu0 }
 0x26a   : > { %1290 = vmatprep.mubr.msk.bf16.mxu1 %vm674_vm4, %v672_v24 }
 0x26d   : > { %v673_v25 = vpop.trf.xlu0 }
 0x26e   : > { %1291 = vmatmul.mubr.msk.bf16.gmra.mrb[12].mxu1 %vm674_vm4, %v673_v25 }
 0x329   : > { %v1280_v26 = vpop.f32.mrb[0].mxu1 }
 0x32a   : > { %v733_v27 = vpop.f32.mrb[1].mxu1  ;;  %v1805_v31 = vmul.f32 0.17677669, %v1280_v26 }
 0x32b   : > { %v1281_v28 = vpop.f32.mrb[2].mxu1  ;;  %v1809_v34 = vmul.f32 0.17677669, %v733_v27 }
 0x32c   : > { %v736_v29 = vpop.f32.mrb[3].mxu1  ;;  %v1813_v37 = vmul.f32 0.17677669, %v1281_v28 }
 0x32d   : > { %v1819_v41 = vmul.f32 0.17677669, %v736_v29 }
 0x331   : > { %v1284_v30 = vpop.f32.mrb[4].mxu1 }
 0x332   : > { %v1807_v32 = vmul.f32 0.17677669, %v1284_v30  ;;  %v749_v33 = vpop.f32.mrb[5].mxu1 }
 0x333   : > { %v1811_v35 = vmul.f32 0.17677669, %v749_v33  ;;  %v1285_v36 = vpop.f32.mrb[6].mxu1 }
 0x334   : > { %v815_v38 = vmax.f32 %v1805_v31, %v1807_v32  ;;  %v1817_v39 = vmul.f32 0.17677669, %v1285_v36  ;;  %v752_v40 = vpop.f32.mrb[7].mxu1 }
 0x335   : > { %v813_v42 = vmax.f32 %v1809_v34, %v1811_v35  ;;  %v1823_v43 = vmul.f32 0.17677669, %v752_v40 }
 0x336   : > { %v816_v44 = vmax.f32 %v1813_v37, %v1817_v39 }
 0x337   : > { %v814_v45 = vmax.f32 %v1819_v41, %v1823_v43 }
 0x339   : > { %v1288_v46 = vpop.f32.mrb[8].mxu1 }
 0x33a   : > { %v1829_v47 = vmul.f32 0.17677669, %v1288_v46  ;;  %v765_v48 = vpop.f32.mrb[9].mxu1 }
 0x33b   : > { %v1831_v49 = vmul.f32 0.17677669, %v765_v48  ;;  %v1289_v50 = vpop.f32.mrb[10].mxu1 }
 0x33c   : > { %v819_v51 = vmax.f32 %v815_v38, %v1829_v47  ;;  %v1834_v52 = vmul.f32 0.17677669, %v1289_v50  ;;  %v768_v53 = vpop.f32.mrb[11].mxu1 }
 0x33d   : > { %v817_v54 = vmax.f32 %v813_v42, %v1831_v49  ;;  %v1837_v55 = vmul.f32 0.17677669, %v768_v53 }
 0x33e   : > { %v820_v56 = vmax.f32 %v816_v44, %v1834_v52 }
 0x33f   : > { %v818_v57 = vmax.f32 %v814_v45, %v1837_v55 }
 0x341   : > { %v1292_v58 = vpop.f32.mrb[12].mxu1 }
 0x342   : > { %v1841_v59 = vmul.f32 0.17677669, %v1292_v58  ;;  %v781_v60 = vpop.f32.mrb[13].mxu1 }
 0x343   : > { %v1843_v61 = vmul.f32 0.17677669, %v781_v60  ;;  %v1293_v62 = vpop.f32.mrb[14].mxu1 }
 0x344   : > { %v823_v63 = vmax.f32 %v819_v51, %v1841_v59  ;;  %v1846_v0 = vmul.f32 0.17677669, %v1293_v62  ;;  %v784_v1 = vpop.f32.mrb[15].mxu1 }
 0x345   : > { %v821_v2 = vmax.f32 %v817_v54, %v1843_v61  ;;  %v1849_v3 = vmul.f32 0.17677669, %v784_v1 }
 0x346   : > { %v824_v4 = vmax.f32 %v820_v56, %v1846_v0 }
 0x347   : > { %v822_v5 = vmax.f32 %v818_v57, %v1849_v3 }
 0x348   : > { %v826_v6 = vmax.f32 %v823_v63, %v824_v4 }
 0x349   : > { %v825_v7 = vmax.f32 %v821_v2, %v822_v5 }
 0x34b   : > { %v827_v8 = vmax.f32 %v825_v7, %v826_v6 }
 0x34d   : > { %v828_v9 = vrot.slane %v827_v8, 4 }
 0x34f   : > { %v829_v10 = vmax.f32 %v827_v8, %v828_v9 }
 0x351   : > { %v830_v12 = vrot.slane %v829_v10, 2 }
 0x353   : > { %v831_v13 = vmax.f32 %v829_v10, %v830_v12 }
 0x355   : > { %v832_v15 = vrot.slane %v831_v13, 1 }
 0x357   : > { %v833_v18 = vmax.f32 %v831_v13, %v832_v15 }
 0x359   : > { %v834_v20 = vmax.f32 %v812_v17, %v833_v18 }
 0x35b   : > { %v835_v21 = vsub.f32 %v812_v17, %v834_v20  ;;  %v842_v22 = vrot.slane %v834_v20, %v1853_v19  ;;  %996 = vst [vmem:[#allocation3] sm:$0x1] %v834_v20 }
 0x35d   : > { %v836_v23 = vmul.f32 1.442695, %v835_v21  ;;  %v844_v24 = vsub.f32 %v1809_v34, %v842_v22  ;;  %v845_v25 = vsub.f32 %v1819_v41, %v842_v22  ;;  %v846_v26 = vsub.f32 %v1805_v31, %v842_v22 }
 0x35e   : > { %v847_v27 = vsub.f32 %v1813_v37, %v842_v22  ;;  %v848_v28 = vsub.f32 %v1811_v35, %v842_v22  ;;  %v849_v29 = vsub.f32 %v1823_v43, %v842_v22  ;;  %v850_v30 = vsub.f32 %v1807_v32, %v842_v22 }
 0x35f   : > { %1428 = vpow2.f32 %v836_v23  ;;  %v851_v33 = vsub.f32 %v1817_v39, %v842_v22  ;;  %v852_v36 = vsub.f32 %v1831_v49, %v842_v22  ;;  %v853_v38 = vsub.f32 %v1837_v55, %v842_v22 }
 0x360   : > { %v854_v34 = vsub.f32 %v1829_v47, %v842_v22  ;;  %v855_v40 = vsub.f32 %v1834_v52, %v842_v22  ;;  %v856_v31 = vsub.f32 %v1843_v61, %v842_v22  ;;  %v857_v37 = vsub.f32 %v1849_v3, %v842_v22 }
 0x361   : > { %v860_v35 = vmul.f32 1.442695, %v844_v24  ;;  %v862_v41 = vmul.f32 1.442695, %v845_v25  ;;  %v864_v42 = vmul.f32 1.442695, %v846_v26  ;;  %v858_v32 = vsub.f32 %v1841_v59, %v842_v22 }
 0x362   : > { %v866_v43 = vmul.f32 1.442695, %v847_v27  ;;  %v859_v39 = vsub.f32 %v1846_v0, %v842_v22  ;;  %v868_v44 = vmul.f32 1.442695, %v848_v28  ;;  %v870_v45 = vmul.f32 1.442695, %v849_v29 }
 0x363   : > { %1430 = vpow2.f32 %v860_v35  ;;  %v872_v46 = vmul.f32 1.442695, %v850_v30  ;;  %v874_v47 = vmul.f32 1.442695, %v851_v33  ;;  %v876_v48 = vmul.f32 1.442695, %v852_v36 }
 0x364   : > { %1432 = vpow2.f32 %v862_v41  ;;  %v878_v49 = vmul.f32 1.442695, %v853_v38  ;;  %v880_v51 = vmul.f32 1.442695, %v854_v34  ;;  %v882_v52 = vmul.f32 1.442695, %v855_v40 }
 0x365   : > { %1434 = vpow2.f32 %v864_v42  ;;  %v884_v54 = vmul.f32 1.442695, %v856_v31  ;;  %v886_v55 = vmul.f32 1.442695, %v857_v37  ;;  %v888_v57 = vmul.f32 1.442695, %v858_v32 }
 0x366   : > { %1436 = vpow2.f32 %v866_v43  ;;  %v890_v59 = vmul.f32 1.442695, %v859_v39  ;;  %v892_v41 = vld [vmem:[#allocation4] sm:$0x1] }
 0x367   : > { %1438 = vpow2.f32 %v868_v44  ;;  %v976_v44 = vld [vmem:[#allocation5 + $0x10] sm:$0xff] }
 0x368   : > { %1440 = vpow2.f32 %v870_v45  ;;  %v974_v45 = vld [vmem:[#allocation5] sm:$0xff] }
 0x369   : > { %v1872_v50 = vpop.eup %1428  ;;  %1442 = vpow2.f32 %v872_v46  ;;  %v977_v46 = vld [vmem:[#allocation5 + $0x18] sm:$0xff] }
 0x36a   : > { %1444 = vpow2.f32 %v874_v47  ;;  %v1876_v53 = vrot.slane %v1872_v50, %v1853_v19  ;;  %v893_v32 = vmul.f32 %v1872_v50, %v892_v41 }
 0x36b   : > { %1446 = vpow2.f32 %v876_v48  ;;  %v975_v48 = vld [vmem:[#allocation5 + $0x8] sm:$0xff] }
 0x36c   : > { %1448 = vpow2.f32 %v878_v49  ;;  %v986_v47 = vmul.f32 %v1876_v53, %v976_v44  ;;  %v985_v50 = vmul.f32 %v1876_v53, %v975_v48 }
 0x36d   : > { %v1431_v56 = vpop.eup %1430  ;;  %1450 = vpow2.f32 %v880_v51  ;;  %v984_v51 = vmul.f32 %v1876_v53, %v974_v45 }
 0x36e   : > { %v1433_v58 = vpop.eup %1432  ;;  %1452 = vpow2.f32 %v882_v52 }
 0x36f   : > { %v1435_v60 = vpop.eup %1434  ;;  %1454 = vpow2.f32 %v884_v54  ;;  %v894_v61 = vadd.f32 %v1433_v58, %v1431_v56  ;;  %v917_v62 = vpack.c.bf16 %v1433_v58, %v1431_v56 }
 0x370   : > { %v1437_v63 = vpop.eup %1436  ;;  %1456 = vpow2.f32 %v886_v55 }
 0x371   : > { %v1439_v0 = vpop.eup %1438  ;;  %v895_v1 = vadd.f32 %v1435_v60, %v894_v61  ;;  %1294 = vmatprep.subr.bf16.mxu0 %v917_v62  ;;  %v918_v2 = vpack.c.bf16 %v1437_v63, %v1435_v60  ;;  %1458 = vpow2.f32 %v888_v57  ;;  %v1581_v61 = vmov (!%p1220_p3), 0.0  }
 0x372   : > { %v1441_v3 = vpop.eup %1440  ;;  %1295 = vmatpush3.bf16.msra.mxu0 %v917_v62  ;;  %1460 = vpow2.f32 %v890_v59  ;;  %v1583_v62 = vmov (!%p1220_p3), 0  }
 0x373   : > { %v1443_v4 = vpop.eup %1442  ;;  %v896_v5 = vadd.f32 %v1437_v63, %v895_v1  ;;  %1296 = vmatprep.subr.bf16.mxu0 %v918_v2  ;;  %v919_v6 = vpack.c.bf16 %v1441_v3, %v1439_v0  ;;  %1462 = vset.pattern.permute.xlu0 (!%p1220_p3), %v1583_v62 }
 0x374   : > { %v1445_v7 = vpop.eup %1444 }
 0x375   : > { %v1447_v8 = vpop.eup %1446  ;;  %v897_v9 = vadd.f32 %v1439_v0, %v896_v5  ;;  %v920_v10 = vpack.c.bf16 %v1445_v7, %v1443_v4 }
 0x376   : > { %v1449_v11 = vpop.eup %1448  ;;  %1297 = vmatpush3.bf16.msra.mxu0 %v918_v2 }
 0x377   : > { %v1451_v12 = vpop.eup %1450  ;;  %v898_v13 = vadd.f32 %v1441_v3, %v897_v9  ;;  %1298 = vmatprep.subr.bf16.mxu0 %v919_v6  ;;  %v921_v14 = vpack.c.bf16 %v1449_v11, %v1447_v8 }
 0x378   : > { %v1453_v15 = vpop.eup %1452 }
 0x379   : > { %v1455_v17 = vpop.eup %1454  ;;  %v899_v18 = vadd.f32 %v1443_v4, %v898_v13  ;;  %v922_v20 = vpack.c.bf16 %v1453_v15, %v1451_v12 }
 0x37a   : > { %v1457_v21 = vpop.eup %1456  ;;  %1299 = vmatpush3.bf16.msra.mxu0 %v919_v6 }
 0x37b   : > { %v1459_v22 = vpop.eup %1458  ;;  %v900_v23 = vadd.f32 %v1445_v7, %v899_v18  ;;  %1300 = vmatprep.subr.bf16.mxu0 %v920_v10  ;;  %v923_v24 = vpack.c.bf16 %v1457_v21, %v1455_v17 }
 0x37c   : > { %v1461_v25 = vpop.eup %1460 }
 0x37d   : > { %v901_v26 = vadd.f32 %v1447_v8, %v900_v23  ;;  %v924_v27 = vpack.c.bf16 %v1461_v25, %v1459_v22 }
 0x37e   : > { %1301 = vmatpush3.bf16.msra.mxu0 %v920_v10 }
 0x37f   : > { %v902_v28 = vadd.f32 %v1449_v11, %v901_v26  ;;  %1302 = vmatprep.subr.bf16.mxu0 %v921_v14  ;;  %v1017_v11 = vld [vmem:[%s1962_s6] sm:$0xf] (!%p1220_p3) }
 0x381   : > { %v903_v29 = vadd.f32 %v1451_v12, %v902_v28 }
 0x382   : > { %1303 = vmatpush3.bf16.msra.mxu0 %v921_v14 }
 0x383   : > { %v904_v30 = vadd.f32 %v1453_v15, %v903_v29  ;;  %1304 = vmatprep.subr.bf16.mxu0 %v922_v20 }
 0x385   : > { %v905_v33 = vadd.f32 %v1455_v17, %v904_v30 }
 0x386   : > { %1305 = vmatpush3.bf16.msra.mxu0 %v922_v20 }
 0x387   : > { %v906_v36 = vadd.f32 %v1457_v21, %v905_v33  ;;  %1306 = vmatprep.subr.bf16.mxu0 %v923_v24 }
 0x389   : > { %v907_v38 = vadd.f32 %v1459_v22, %v906_v36 }
 0x38a   : > { %1307 = vmatpush3.bf16.msra.mxu0 %v923_v24 }
 0x38b   : > { %v908_v34 = vadd.f32 %v1461_v25, %v907_v38  ;;  %1308 = vmatprep.subr.bf16.mxu0 %v924_v27 }
 0x38d   : > { %v909_v40 = vrot.slane %v908_v34, 4 }
 0x38e   : > { %1309 = vmatpush3.bf16.msra.mxu0 %v924_v27 }
 0x38f   : > { %v910_v31 = vadd.f32 %v909_v40, %v908_v34  ;;  %1314 = vmatprep.subr.bf16.mxu0 (!%p1220_p3), %v1581_v61 }
 0x391   : > { %v911_v37 = vrot.slane %v910_v31, 2  ;;  %1311 = vmatmul.mubr.bf16.vlgmr.msra.gmra.mrb[8].mxu0 %v1795_v16  ;;  %v987_v16 = vmul.f32 %v1876_v53, %v977_v46  ;;  %v1020_v53 = vld [vmem:[%s1963_s7] sm:$0xff] (!%p1220_p3) }
 0x392   : > { %1318 = vmatprep.mubr.msk.bf16.mxu0 (!%p1220_p3), %vm1582_vm5, %v1581_v61  ;;  %1023 = vperm.xlu0 (!%p1220_p3), %1462, %v1020_v53  }
 0x393   : > { %v912_v35 = vadd.f32 %v911_v37, %v910_v31 }
 0x395   : > { %v913_v42 = vrot.slane %v912_v35, 1 }
 0x397   : > { %v914_v43 = vadd.f32 %v913_v42, %v912_v35 }
 0x399   : > { %v915_v39 = vadd.f32 %v914_v43, %v893_v32 }
 0x39b   : > { %916 = vst [vmem:[#allocation4] sm:$0x1] %v915_v39 }
 0x3a2   : > { %v1005_v60 = vld [vmem:[#allocation4] sm:$0x1] (!%p1220_p3) }
 0x3a3   : > { %1463 = vrcp.f32 (!%p1220_p3), %v1005_v60 }
 0x3ad   : > { %v1464_v0 = vpop.eup (!%p1220_p3), %1463 }
 0x3ae   : > { %v1011_v4 = vrot.slane (!%p1220_p3), %v1464_v0, %v1853_v19 }
 0x411   : > { %v1024_v12 = vpop.permute.xlu0 (!%p1220_p3), %1023 }
 0x464   : > { %v1312_v49 = vpop.f32.mrb[8].mxu0  ;;  %1000 = sbr.rel (%p1220_p3) target bundleno = 1366 (0x556), region = 60 }
 0x465   : > { %v990_v52 = vadd.f32 %v1312_v49, %v986_v47  ;;  %v959_v54 = vpop.f32.mrb[9].mxu0 }
 0x466   : > { %v988_v55 = vadd.f32 %v984_v51, %v959_v54  ;;  %v1313_v56 = vpop.f32.mrb[10].mxu0 }
 0x467   : > { %994 = vst [vmem:[#allocation5 + $0x10] sm:$0xff] %v990_v52  ;;  %v991_v57 = vadd.f32 %v1313_v56, %v987_v16  ;;  %v962_v58 = vpop.f32.mrb[11].mxu0 }
 0x468   : > { %992 = vst [vmem:[#allocation5] sm:$0xff] %v988_v55  ;;  %v989_v59 = vadd.f32 %v985_v50, %v962_v58 }
 0x469   : > { %995 = vst [vmem:[#allocation5 + $0x18] sm:$0xff] %v991_v57 }
 0x46a   : > { %993 = vst [vmem:[#allocation5 + $0x8] sm:$0xff] %v989_v59 }
 0x46e   : > { %v1003_v2 = vld [vmem:[#allocation5 + $0x10] sm:$0xff] }
 0x46f   : > { %v1001_v63 = vld [vmem:[#allocation5] sm:$0xff]  ;;  %v1015_v7 = vmul.f32 %v1011_v4, %v1003_v2 }
 0x470   : > { %v1004_v3 = vld [vmem:[#allocation5 + $0x18] sm:$0xff]  ;;  %v1013_v5 = vmul.f32 %v1011_v4, %v1001_v63 }
 0x471   : > { %v1002_v1 = vld [vmem:[#allocation5 + $0x8] sm:$0xff]  ;;  %v1016_v8 = vmul.f32 %v1011_v4, %v1004_v3 }
 0x472   : > { %v1014_v6 = vmul.f32 %v1011_v4, %v1002_v1 }
 0x473   : > { %v1019_v10 = vpack.c.bf16 %v1016_v8, %v1015_v7 }
 0x474   : > { %v1018_v9 = vpack.c.bf16 %v1014_v6, %v1013_v5 }
 0x476   : > { %1315 = vmatpush3.bf16.msra.mxu0 %v1018_v9 }
 0x477   : > { %1316 = vmatprep.subr.bf16.mxu0 %v1581_v61 }
 0x47a   : > { %1317 = vmatpush3.bf16.msra.mxu0 %v1019_v10 }
 0x47d   : > { %1319 = vmatmul.mubr.msk.bf16.vlgmr.msra.gmra.mrb[0].mxu0 %vm674_vm4, %v1017_v11 }
 0x550   : > { %v1063_v13 = vpop.f32.mrb[0].mxu0 }
 0x551   : > { %v1064_v14 = vadd.f32 %v1063_v13, %v1024_v12  ;;  %v1320_v19 = vpop.f32.mrb[1].mxu0 }
 0x552   : > { %v1066_v15 = vpop.f32.mrb[2].mxu0 }
 0x553   : > { %v1069_v17 = vmax.f32 %v1064_v14, 0.0  ;;  %v1321_v18 = vpop.f32.mrb[3].mxu0 }
 0x555   : > { %1070 = vst [vmem:[%s350_s27] sm:$0xff] %v1069_v17 }
 0x556 PF: > { %s1223_s24 = sshll.u32 %s1559_s10, 1  ;;  %s1087_s22 = sshll.u32 %s350_s27, 4  ;;  %s1899_s22 = int_to_ptr.vmem [resolvable:$true] %s1087_s22 }
 0x557   : > { %s1083_s25 = sadd.s32 %s1555_s9, %s1223_s24  ;;  %s1986_s15 = sand.u32 1, %s1543_s28  }
 0x558   : > { %s1224_s23 = sshll.u32 %s1083_s25, 7  ;;  %s1072_s17 = scalar_lea.sflag [#allocation7], %s1986_s15 }
 0x559   : > { %s1085_s29 = scalar_lea.hbm %s1964_s8, %s1224_s23  ;;  %s1465_s13 = scalar_lea.vmem %s1899_s22, 128 }
 0x55a   : > { %p1466_p4 = scmp.ne.s32.totalorder %s1899_s22, %s1465_s13  ;;  %s1584_s9 = smov [#allocation6]  }
 0x55b   : > { %s1469_s10 = sshll.u32 %s1584_s9, 4  ;;  %s1470_s10 = int_to_ptr.vmem [resolvable:$false] %s1469_s10 }
 0x55c   : > { %p1467_p5 = pnand %p1466_p4, %p1692_p6  ;;  %s1471_s27 = scalar_lea.vmem %s1470_s10, 256 }
 0x55d   : > { %p1472_p9 = scmp.lt.s32.totalorder %s1899_s22, %s1470_s10  ;;  %p1473_p10 = scmp.lt.s32.totalorder %s1471_s27, %s1465_s13 }
 0x55e   : > { %p1468_p8 = pneg %p1467_p5 }
 0x55f   : > { %p1474_p11 = por %p1473_p10, %p1472_p9 }
 0x561   : > { %p1475_p12 = pnand %p1474_p11, %p1468_p8 }
 0x563   : > { %1478 = shalt.err (!%p1475_p12)
}
 0x564   : > { %s1479_s16 = scalar_lea.hbm %s1085_s29, 128  ;;  %s1483_s21 = scalar_lea.hbm %s1964_s8, 512 }
 0x565   : > { %p1480_p13 = scmp.ne.s32.totalorder %s1085_s29, %s1479_s16  ;;  %p1484_p2 = scmp.lt.u32.totalorder %s1085_s29, %s1964_s8 }
 0x566   : > { %p1485_p3 = scmp.lt.u32.totalorder %s1483_s21, %s1479_s16  ;;  %p1487_p5 = scmp.lt.u32.totalorder %s1479_s16, %s1085_s29 }
 0x567   : > { %p1481_p0 = pnand %p1480_p13, %p1692_p6 }
 0x568   : > { %p1486_p4 = por %p1485_p3, %p1484_p2 }
 0x569   : > { %p1482_p1 = pneg %p1481_p0 }
 0x56a   : > { %p1488_p9 = por %p1487_p5, %p1486_p4 }
 0x56c   : > { %p1489_p8 = pnand %p1488_p9, %p1482_p1 }
 0x56e   : > { %1492 = shalt.err (!%p1489_p8)
}
 0x56f   : > { %1324 = dma.vmem_to_hbm [thread:$0]  (%p1692_p6), %s1899_s22, 128, %s1085_s29, %s1072_s17  }
 0x570 PF: > { %s1987_s24 = sld [smem:[#allocation9_spill]]  ;;  %p1330_p10 = scmp.ge.s32.totalorder %s1575_s14, 2 }
 0x572   : > { %p1327_p11 = pnand %p1330_p10, %p1699_p7 }
 0x576   : > { %s1099_s23 = sand.u32 1, %s1987_s24  }
 0x577   : > { %s1100_s11 = scalar_lea.sflag [#allocation7], %s1099_s23 }
 0x578   : > { %1534 = dma.done.wait (!%p1327_p11), %s1100_s11, 128  }
 0x579   : > { %1536 = vsyncadd (!%p1327_p11), %s1100_s11, 4294967168  ;;  %s21_s14 = sadd.s32 1, %s1575_s14   ;;  %s1989_s12 = sld [smem:[#allocation10_spill]] }
 0x57a   : > { %p18_p12 = scmp.ge.s32.totalorder %s21_s14, 10   ;;  %s1990_s29 = sld [smem:[#allocation18_spill]] }
 0x57b   : > { %s1991_s30 = sld [smem:[#allocation11_spill]]  ;;  %s1992_s9 = sld [smem:[#allocation12_spill]] }
 0x57c   : > { %s1993_s10 = sld [smem:[#allocation13_spill]]  ;;  %s1994_s11 = sld [smem:[#allocation14_spill]] }
 0x57d   : > { %s1995_s20 = sld [smem:[#allocation15_spill]]  ;;  %s1996_s13 = sld [smem:[#allocation17_spill]] }
 0x57e   : > { %s1997_s27 = smov %s1543_s28  ;;  %20 = sbr.rel (!%p18_p12) target bundleno = 6 (0x6), region = 98 }
 0x57f   : > { %s1998_s28 = smov %s1989_s12 }
 0x583   : > { %s1999_s12 = smov %s1995_s20 }
 0x585   :  { %1105 = vsyncpa [#allocation7], 1 }
 0x586   :  { %1107 = vsyncpa [#allocation7 + $0x1], 1 }

</bundles_post_ra>
